<compile_context>
chip_gen: v7x
topology: tpu7x:2x2x1
jax: 0.10.0
libtpu: 0.0.40
codegen_flags: <defaults>
</compile_context>

<pallas_src>
import functools

import jax
import jax.numpy as jnp
from jax.experimental import pallas as pl
from jax.experimental.pallas import tpu as pltpu


HID_PAD = 128   # fused (actor||critic) hidden width, padded to one full lane dim
OUT_PAD = 128   # lane-dense output slab width (policy cols 0..A-1, value col A)
BIAS_ROWS = 8   # bias block padded to a full sublane group


def _round_up(n, m):
    return ((n + m - 1) // m) * m


def a2c_kernel(x_ref, p_ref, out_ref, *, latent_dim, n_actions):
    x = x_ref[...]                                              # [Bt, L]

    # Static, sublane-aligned views into the single packed parameter array.
    w1 = p_ref[0:latent_dim, :]                                 # [L, 128]
    w2 = p_ref[latent_dim:latent_dim + HID_PAD, :]              # [128, 128]
    bias = p_ref[latent_dim + HID_PAD:latent_dim + HID_PAD + BIAS_ROWS, :]
    b1 = bias[0:1, :]                                           # [1, 128]
    b2 = bias[1:2, :]                                           # [1, 128]

    # ---- Fused first layer: actor || critic, lane-dense [Bt, 128] ----------
    h = jnp.dot(x, w1, preferred_element_type=jnp.float32) + b1
    h = jnp.maximum(h, 0.0)                                     # ReLU (make_fc)

    # ---- Fused second layer: block-diagonal actor-head / critic-head -------
    # cols [0, A) = actor logits, col A = critic value, remaining cols = 0.
    out2 = jnp.dot(h, w2, preferred_element_type=jnp.float32) + b2

    # ---- Actor epilogue: ReLU on logits, masked softmax (no -inf sentinel) -
    col = jax.lax.broadcasted_iota(jnp.int32, out2.shape, 1)
    actor_mask = col < n_actions
    relu_logits = jnp.where(actor_mask, jnp.maximum(out2, 0.0), 0.0)
    m = jnp.max(relu_logits, axis=-1, keepdims=True)            # in-mask max (>= 0)
    e = jnp.where(actor_mask, jnp.exp(relu_logits - m), 0.0)
    denom = jnp.sum(e, axis=-1, keepdims=True)
    r = pl.reciprocal(denom, approx=True)                       # EUP slot
    r = r * (2.0 - denom * r)                                   # Newton step -> f32 eps
    policy = e * r

    # ---- Single lane-dense store: cols [0,A)=policy, col A=value, rest 0 ---
    out_ref[...] = jnp.where(actor_mask, policy, out2)


def fuse_params(p):
    """Fold raw per-layer params into the packed layout consumed by the kernel."""
    L, H = p["wa1"].shape
    A = p["wa2"].shape[1]
    assert 2 * H <= HID_PAD and A + 1 <= OUT_PAD

    # First layer: actor || critic weights -> [L, 128] (zero cols beyond 2H).
    w1 = jnp.zeros((L, HID_PAD), jnp.float32)
    w1 = w1.at[:, :H].set(p["wa1"])
    w1 = w1.at[:, H:2 * H].set(p["wc1"])

    # Second layer: block-diagonal [128, 128] (actor cols 0..A-1, critic col A).
    w2 = jnp.zeros((HID_PAD, OUT_PAD), jnp.float32)
    w2 = w2.at[:H, :A].set(p["wa2"])
    w2 = w2.at[H:2 * H, A].set(p["wc2"][:, 0])

    # Bias block: row 0 = b1 (padded to 128), row 1 = b2, rows 2..7 zero.
    bias = jnp.zeros((BIAS_ROWS, OUT_PAD), jnp.float32)
    bias = bias.at[0, :H].set(p["ba1"][0])
    bias = bias.at[0, H:2 * H].set(p["bc1"][0])
    bias = bias.at[1, :A].set(p["ba2"][0])
    bias = bias.at[1, A].set(p["bc2"][0, 0])

    # Single packed parameter array -> one DMA.
    params = jnp.concatenate([w1, w2, bias], axis=0)            # [L+128+8, 128]
    return {"params": params, "n_actions": A, "latent_dim": L}


def a2c_forward(x, fused, *, max_block_b=512):
    """x: [B, L] float32.  Returns (policy [B, A], value [B, 1])."""
    B, L = x.shape
    A = fused["n_actions"]
    params = fused["params"]

    # Row tile: multiple of 8, capped so small batches stay a single grid step.
    block_b = min(max_block_b, _round_up(B, 8))
    b_pad = _round_up(B, block_b)
    if b_pad != B:
        x = jnp.pad(x, ((0, b_pad - B), (0, 0)))
    grid = (b_pad // block_b,)

    cost = pl.CostEstimate(
        flops=2 * b_pad * (L * HID_PAD + HID_PAD * OUT_PAD),
        transcendentals=b_pad * OUT_PAD,
        bytes_accessed=(x.size + params.size + b_pad * OUT_PAD) * 4,
    )

    out_slab = pl.pallas_call(
        functools.partial(a2c_kernel, latent_dim=L, n_actions=A),
        out_shape=jax.ShapeDtypeStruct((b_pad, OUT_PAD), jnp.float32),
        grid=grid,
        in_specs=[
            pl.BlockSpec((block_b, L), lambda i: (i, 0)),        # x: batch-tiled
            pl.BlockSpec(params.shape, lambda i: (0, 0)),        # params: VMEM-resident
        ],
        out_specs=pl.BlockSpec((block_b, OUT_PAD), lambda i: (i, 0)),
        compiler_params=pltpu.CompilerParams(
            dimension_semantics=("parallel",)),                  # v7x: 2 TCs
        cost_estimate=cost,
    )(x, params)

    policy = out_slab[:B, :A]
    value = out_slab[:B, A:A + 1]
    return policy, value


def init_params(key, latent_dim, hidden, n_actions):
    """Deterministic synthetic parameter init (Linear weights stored as (in, out))."""
    ks = jax.random.split(key, 8)

    def lin(kw, kb, fan_in, fan_out):
        bound = 1.0 / jnp.sqrt(fan_in)
        w = jax.random.uniform(kw, (fan_in, fan_out), jnp.float32, -bound, bound)
        b = jax.random.uniform(kb, (1, fan_out), jnp.float32, -bound, bound)
        return w, b

    wa1, ba1 = lin(ks[0], ks[1], latent_dim, hidden)
    wa2, ba2 = lin(ks[2], ks[3], hidden, n_actions)
    wc1, bc1 = lin(ks[4], ks[5], latent_dim, hidden)
    wc2, bc2 = lin(ks[6], ks[7], hidden, 1)
    return dict(wa1=wa1, ba1=ba1, wa2=wa2, ba2=ba2,
                wc1=wc1, bc1=bc1, wc2=wc2, bc2=bc2)


def a2c_reference(x, p):
    """Pure-JAX reference mirroring the PyTorch forward."""
    h_a = jnp.maximum(x @ p["wa1"] + p["ba1"], 0.0)
    logits = jnp.maximum(h_a @ p["wa2"] + p["ba2"], 0.0)
    policy = jax.nn.softmax(logits, axis=-1)
    h_c = jnp.maximum(x @ p["wc1"] + p["bc1"], 0.0)
    value = h_c @ p["wc2"] + p["bc2"]
    return policy, value


if __name__ == "__main__":
    B, L, H, A = 8, 32, 32, 6   # batch, latent_dim, hidden, n_actions

    key = jax.random.PRNGKey(0)
    k_x, k_p = jax.random.split(key)
    x = jax.random.normal(k_x, (B, L), dtype=jnp.float32)
    params = init_params(k_p, L, H, A)
    fused = fuse_params(params)

    policy, value = a2c_forward(x, fused)
    jax.block_until_ready((policy, value))

    ref_policy, ref_value = a2c_reference(x, params)
    assert policy.shape == (B, A) and value.shape == (B, 1)
    assert jnp.allclose(policy, ref_policy, atol=1e-4, rtol=1e-4)
    assert jnp.allclose(value, ref_value, atol=1e-4, rtol=1e-4)
    assert jnp.allclose(jnp.sum(policy, axis=-1), 1.0, atol=1e-5)

    print("KERNEL_OK")
</pallas_src>

<mosaic_0001>
module attributes {stable_mosaic.version = 11 : i64} {
  func.func @a2c_kernel(%arg0: i32, %arg1: memref<8x32xf32, #tpu.memory_space<vmem>>, %arg2: memref<168x128xf32, #tpu.memory_space<vmem>>, %arg3: memref<8x128xf32, #tpu.memory_space<vmem>>) attributes {dimension_semantics = [#tpu.dimension_semantics<parallel>], iteration_bounds = array<i64: 1>, scalar_prefetch = 0 : i64, scratch_operands = 0 : i64, tpu.core_type = #tpu.core_type<tc>, window_params = [{transform_indices = @transform_0, window_bounds = array<i64: 8, 32>}, {pipeline_mode = #tpu.pipeline_mode<synchronous>, transform_indices = @transform_1, window_bounds = array<i64: 168, 128>}, {transform_indices = @transform_2, window_bounds = array<i64: 8, 128>}]} {
    %c0 = arith.constant 0 : index
    %c0_0 = arith.constant 0 : index
    %0 = vector.load %arg1[%c0, %c0_0] : memref<8x32xf32, #tpu.memory_space<vmem>>, vector<8x32xf32>
    %c0_1 = arith.constant 0 : index
    %c0_2 = arith.constant 0 : index
    %1 = vector.load %arg2[%c0_1, %c0_2] : memref<168x128xf32, #tpu.memory_space<vmem>>, vector<32x128xf32>
    %c32 = arith.constant 32 : index
    %c0_3 = arith.constant 0 : index
    %2 = vector.load %arg2[%c32, %c0_3] : memref<168x128xf32, #tpu.memory_space<vmem>>, vector<128x128xf32>
    %c160 = arith.constant 160 : index
    %c0_4 = arith.constant 0 : index
    %3 = vector.load %arg2[%c160, %c0_4] : memref<168x128xf32, #tpu.memory_space<vmem>>, vector<8x128xf32>
    %4 = vector.extract_strided_slice %3 {offsets = [0, 0], sizes = [1, 128], strides = [1, 1]} : vector<8x128xf32> to vector<1x128xf32>
    %5 = vector.extract_strided_slice %3 {offsets = [1, 0], sizes = [1, 128], strides = [1, 1]} : vector<8x128xf32> to vector<1x128xf32>
    %cst = arith.constant dense<0.000000e+00> : vector<8x128xf32>
    %6 = tpu.matmul %0, %1, %cst {dimension_numbers = #tpu.dot_dimension_numbers<[1], [0], [0], [1], [0, 0, 1, 1], [], []>} : vector<8x32xf32>, vector<32x128xf32>, vector<8x128xf32> -> vector<8x128xf32>
    %7 = vector.broadcast %4 : vector<1x128xf32> to vector<8x128xf32>
    %8 = arith.addf %6, %7 : vector<8x128xf32>
    %cst_5 = arith.constant 0.000000e+00 : f32
    %9 = vector.broadcast %cst_5 : f32 to vector<8x128xf32>
    %10 = arith.maximumf %8, %9 : vector<8x128xf32>
    %cst_6 = arith.constant dense<0.000000e+00> : vector<8x128xf32>
    %11 = tpu.matmul %10, %2, %cst_6 {dimension_numbers = #tpu.dot_dimension_numbers<[1], [0], [0], [1], [0, 0, 1, 1], [], []>} : vector<8x128xf32>, vector<128x128xf32>, vector<8x128xf32> -> vector<8x128xf32>
    %12 = vector.broadcast %5 : vector<1x128xf32> to vector<8x128xf32>
    %13 = arith.addf %11, %12 : vector<8x128xf32>
    %14 = tpu.iota {dimensions = array<i32: 1>} : vector<8x128xi32>
    %c6_i32 = arith.constant 6 : i32
    %15 = vector.broadcast %c6_i32 : i32 to vector<8x128xi32>
    %16 = arith.cmpi slt, %14, %15 : vector<8x128xi32>
    %cst_7 = arith.constant 0.000000e+00 : f32
    %17 = vector.broadcast %cst_7 : f32 to vector<8x128xf32>
    %18 = arith.maximumf %13, %17 : vector<8x128xf32>
    %cst_8 = arith.constant 0.000000e+00 : f32
    %19 = vector.broadcast %cst_8 : f32 to vector<8x128xf32>
    %20 = arith.select %16, %18, %19 : vector<8x128xi1>, vector<8x128xf32>
    %cst_9 = arith.constant dense<0xFF800000> : vector<8xf32>
    %21 = vector.multi_reduction <maximumf>, %20, %cst_9 [1] : vector<8x128xf32> to vector<8xf32>
    %22 = vector.shape_cast %21 : vector<8xf32> to vector<8x1xf32>
    %23 = vector.broadcast %22 : vector<8x1xf32> to vector<8x128xf32>
    %24 = arith.subf %20, %23 : vector<8x128xf32>
    %25 = math.exp %24 : vector<8x128xf32>
    %cst_10 = arith.constant 0.000000e+00 : f32
    %26 = vector.broadcast %cst_10 : f32 to vector<8x128xf32>
    %27 = arith.select %16, %25, %26 : vector<8x128xi1>, vector<8x128xf32>
    %cst_11 = arith.constant dense<0.000000e+00> : vector<8xf32>
    %28 = vector.multi_reduction <add>, %27, %cst_11 [1] : vector<8x128xf32> to vector<8xf32>
    %29 = vector.shape_cast %28 : vector<8xf32> to vector<8x1xf32>
    %30 = tpu.reciprocal %29 {approx = true} : vector<8x1xf32> -> vector<8x1xf32>
    %31 = arith.mulf %29, %30 : vector<8x1xf32>
    %cst_12 = arith.constant 2.000000e+00 : f32
    %32 = vector.broadcast %cst_12 : f32 to vector<8x1xf32>
    %33 = arith.subf %32, %31 : vector<8x1xf32>
    %34 = arith.mulf %30, %33 : vector<8x1xf32>
    %35 = vector.broadcast %34 : vector<8x1xf32> to vector<8x128xf32>
    %36 = arith.mulf %27, %35 : vector<8x128xf32>
    %37 = arith.select %16, %36, %13 : vector<8x128xi1>, vector<8x128xf32>
    %c0_13 = arith.constant 0 : index
    %c0_14 = arith.constant 0 : index
    %38 = vector.load %arg3[%c0_13, %c0_14] : memref<8x128xf32, #tpu.memory_space<vmem>>, vector<8x128xf32>
    tpu.vector_store %arg3[%c0_13, %c0_14], %37 {strides = array<i32>} : memref<8x128xf32, #tpu.memory_space<vmem>>, vector<8x128xf32>,
    return
  }
  func.func @transform_0(%arg0: i32) -> (i32, i32) {
    %c0_i32 = arith.constant 0 : i32
    %c0_i32_0 = arith.constant 0 : i32
    return %arg0, %c0_i32 : i32, i32
  }
  func.func @transform_1(%arg0: i32) -> (i32, i32) {
    %c0_i32 = arith.constant 0 : i32
    %c0_i32_0 = arith.constant 0 : i32
    %c0_i32_1 = arith.constant 0 : i32
    return %c0_i32, %c0_i32_0 : i32, i32
  }
  func.func @transform_2(%arg0: i32) -> (i32, i32) {
    %c0_i32 = arith.constant 0 : i32
    %c0_i32_0 = arith.constant 0 : i32
    return %arg0, %c0_i32 : i32, i32
  }
}

</mosaic_0001>

<bundles_post_ra>
// kernel: tpu_custom_call.1
= control target key start
LH: loop header
LB: loop body
LE: loop exit
PB: predicated region body
PF: predicated region fallthrough
CT: control target
= control target key end

     0   :  { %7 = vsyncpa [#allocation3], 0  ;;  %s501_s0 = inlined_call_operand.hbm [shape: f32[8,32], index: 0, kind: input, shape index: {}]   ;;  %s502_s1 = inlined_call_operand.hbm [shape: f32[168,128], index: 1, kind: input, shape index: {}]   ;;  %s503_s2 = inlined_call_operand.hbm [shape: f32[8,128], index: 2, kind: output, shape index: {}]  }
   0x1   :  { %8 = vsyncpa [#allocation6], 0 }
   0x2   :  { %9 = vsyncpa [#allocation4], 0  ;;  %s432_s9 = smov [#allocation2]   ;;  %s433_s11 = smov [#allocation5]  }
   0x3   :  { %s16_s10 = sshll.u32 %s432_s9, 4  ;;  %s25_s12 = sshll.u32 %s433_s11, 4  ;;  %s17_s10 = int_to_ptr.vmem [resolvable:$true] %s16_s10  ;;  %s455_s12 = int_to_ptr.vmem [resolvable:$true] %s25_s12 }
   0x4   :  { %s360_s15 = scalar_lea.hbm %s501_s0, 128 }
   0x5   :  { %p361_p0 = scmp.ne.s32.totalorder %s501_s0, %s360_s15  ;;  %p364_p1 = scmp.lt.u32.totalorder %s360_s15, %s501_s0 }
   0x7   :  { %p366_p2 = pnand %p364_p1, %p361_p0 }
   0x9   :  { %369 = shalt.err (!%p366_p2)
}
   0xa   :  { %s370_s20 = scalar_lea.vmem %s17_s10, 128  ;;  %p375_p4 = scmp.lt.s32.totalorder %s17_s10, %s17_s10 }
   0xb   :  { %p371_p3 = scmp.ne.s32.totalorder %s17_s10, %s370_s20  ;;  %p376_p5 = scmp.lt.s32.totalorder %s370_s20, %s370_s20 }
   0xd   :  { %p377_p6 = por %p376_p5, %p375_p4 }
   0xf   :  { %p378_p7 = pnand %p377_p6, %p371_p3 }
  0x11   :  { %381 = shalt.err (!%p378_p7)
}
  0x12   :  { %19 = dma.hbm_to_vmem [thread:$0]  %s501_s0, 128, %s17_s10, [#allocation3]  }
  0x13   :  { %s382_s25 = scalar_lea.hbm %s502_s1, 2688 }
  0x14   :  { %p383_p8 = scmp.ne.s32.totalorder %s502_s1, %s382_s25  ;;  %p386_p9 = scmp.lt.u32.totalorder %s382_s25, %s502_s1 }
  0x16   :  { %p388_p10 = pnand %p386_p9, %p383_p8 }
  0x18   :  { %391 = shalt.err (!%p388_p10)
}
  0x19   :  { %s392_s30 = scalar_lea.vmem %s455_s12, 2688  ;;  %p397_p12 = scmp.lt.s32.totalorder %s455_s12, %s455_s12 }
  0x1a   :  { %p393_p11 = scmp.ne.s32.totalorder %s455_s12, %s392_s30  ;;  %p398_p13 = scmp.lt.s32.totalorder %s392_s30, %s392_s30 }
  0x1c   :  { %p399_p0 = por %p398_p13, %p397_p12 }
  0x1e   :  { %p400_p1 = pnand %p399_p0, %p393_p11 }
  0x20   :  { %403 = shalt.err (!%p400_p1)
}
  0x21   :  { %s434_s0 = smov 128   ;;  %s435_s3 = smov 8  }
  0x22   :  { %31 = dma.hbm_to_vmem [thread:$0]  %s502_s1, 2688, %s455_s12, [#allocation6], %s434_s0, %s434_s0, %s435_s3  }
  0x23   :  { %426 = dma.done.wait [#allocation3], 128  }
  0x24   :  { %427 = vsyncadd [#allocation3], 4294967168 }
  0x25   :  { %428 = dma.done.wait [#allocation6], 2688  }
  0x26   :  { %429 = vsyncadd [#allocation6], 4294964608  ;;  %v436_v0 = vmov 0.0|0.0   ;;  %vm437_vm0 = vmmov 0   ;;  %v438_v1 = vmov 0.0   ;;  %v39_v2 = vld [vmem:[#allocation5] sm:$0xff]  ;;  %v60_v33 = vlaneseq }
  0x27   :  { %318 = vmatprep.subr.bf16.mxu0 %v436_v0  ;;  %280 = vmatprep.mubr.msk.f32.mxu0 %vm437_vm0, %v438_v1  ;;  %v40_v3 = vld [vmem:[#allocation5 + $0x8] sm:$0xff]  ;;  %v41_v4 = vld [vmem:[#allocation5 + $0x10] sm:$0xff]  ;;  %v42_v6 = vld [vmem:[#allocation5 + $0x18] sm:$0xff]  ;;  %vm64_vm1 = vcmask 261120   ;;  %s439_s1 = smov [#allocation7]  }
  0x28   :  { %324 = vmatprep.subr.bf16.mxu1 %v436_v0  ;;  %315 = vmatprep.mubr.msk.f32.mxu1 %vm437_vm0, %v438_v1  ;;  %v319_v5 = vpack.c.bf16 %v40_v3, %v39_v2  ;;  %v43_v7 = vld [vmem:[#allocation5 + $0x20] sm:$0xff]  ;;  %v44_v8 = vld [vmem:[#allocation5 + $0x28] sm:$0xff]  ;;  %v45_v9 = vld [vmem:[#allocation5 + $0x30] sm:$0xff]  ;;  %v322_v11 = vpack.c.bf16 %v42_v6, %v41_v4  ;;  %v61_v34 = vshrl.u32 %v60_v33, 7  ;;  %v214_v44 = vand.u32 127, %v60_v33  ;;  %s239_s6 = sshll.u32 %s439_s1, 4  ;;  %s240_s6 = int_to_ptr.vmem [resolvable:$true] %s239_s6 }
  0x29   :  { %v46_v10 = vld [vmem:[#allocation5 + $0x38] sm:$0xff]  ;;  %v325_v12 = vpack.c.bf16 %v44_v8, %v43_v7  ;;  %v47_v14 = vld [vmem:[#allocation5 + $0x40] sm:$0xff]  ;;  %v48_v15 = vld [vmem:[#allocation5 + $0x48] sm:$0xff]  ;;  %s404_s7 = scalar_lea.vmem %s240_s6, 128  ;;  %p409_p3 = scmp.lt.s32.totalorder %s240_s6, %s240_s6 }
  0x2a   :  { %320 = vmatpush3.bf16.msra.mxu0 %v319_v5  ;;  %v328_v13 = vpack.c.bf16 %v46_v10, %v45_v9  ;;  %v38_v16 = vld [vmem:[#allocation2] sm:$0xff]  ;;  %v331_v17 = vpack.c.bf16 %v48_v15, %v47_v14  ;;  %v49_v18 = vld [vmem:[#allocation5 + $0x50] sm:$0xff]  ;;  %v51_v21 = vld [vmem:[#allocation5 + $0x60] sm:$0xff]  ;;  %v62_v35 = vsub.s32 0, %v61_v34  ;;  %v141_v42 = vsub.s32 1, %v61_v34  ;;  %p405_p2 = scmp.ne.s32.totalorder %s240_s6, %s404_s7  ;;  %p410_p4 = scmp.lt.s32.totalorder %s404_s7, %s404_s7 }
  0x2b   :  { %321 = vmatprep.subr.bf16.mxu0 %v436_v0  ;;  %326 = vmatpush3.bf16.msra.mxu1 %v325_v12  ;;  %v50_v19 = vld [vmem:[#allocation5 + $0x58] sm:$0xff]  ;;  %v52_v22 = vld [vmem:[#allocation5 + $0x68] sm:$0xff]  ;;  %v53_v24 = vld [vmem:[#allocation5 + $0x70] sm:$0xff]  ;;  %vm215_vm2 = vcmp.lt.s32.totalorder %v214_v44, 6 }
  0x2c   :  { %327 = vmatprep.subr.bf16.mxu1 %v436_v0  ;;  %v334_v20 = vpack.c.bf16 %v50_v19, %v49_v18  ;;  %v337_v23 = vpack.c.bf16 %v52_v22, %v51_v21  ;;  %v54_v25 = vld [vmem:[#allocation5 + $0x78] sm:$0xff]  ;;  %v55_v27 = vld [vmem:[#allocation5 + $0x80] sm:$0xff]  ;;  %v56_v28 = vld [vmem:[#allocation5 + $0x88] sm:$0xff]  ;;  %p411_p5 = por %p410_p4, %p409_p3 }
  0x2d   :  { %v340_v26 = vpack.c.bf16 %v54_v25, %v53_v24  ;;  %v343_v29 = vpack.c.bf16 %v56_v28, %v55_v27  ;;  %v57_v30 = vld [vmem:[#allocation5 + $0x90] sm:$0xff]  ;;  %v58_v31 = vld [vmem:[#allocation5 + $0x98] sm:$0xff]  ;;  %v59_v36 = vld [vmem:[#allocation5 + $0xa0] sm:$0xff] }
  0x2e   :  { %323 = vmatpush3.bf16.msra.mxu0 %v322_v11  ;;  %v346_v32 = vpack.c.bf16 %v58_v31, %v57_v30  ;;  %v63_v37 = vrot.slane %v59_v36, %v62_v35  ;;  %v142_v43 = vrot.slane %v59_v36, %v141_v42  ;;  %p412_p6 = pnand %p411_p5, %p405_p2 }
  0x2f   :  { %329 = vmatpush3.bf16.msra.mxu1 %v328_v13 }
  0x30   :  { %330 = vmatprep.subr.bf16.mxu1 %v436_v0 }
  0x31   :  { %281 = vmatmul.mubr.msk.f32.vlgmr.msra.gmra.mrb[0].mxu0 %vm64_vm1, %v38_v16 }
  0x33   :  { %332 = vmatpush3.bf16.msra.mxu1 %v331_v17 }
  0x34   :  { %333 = vmatprep.subr.bf16.mxu1 %v436_v0 }
  0x37   :  { %335 = vmatpush3.bf16.msra.mxu1 %v334_v20 }
  0x38   :  { %336 = vmatprep.subr.bf16.mxu1 %v436_v0 }
  0x3b   :  { %338 = vmatpush3.bf16.msra.mxu1 %v337_v23 }
  0x3c   :  { %339 = vmatprep.subr.bf16.mxu1 %v436_v0 }
  0x3f   :  { %341 = vmatpush3.bf16.msra.mxu1 %v340_v26 }
  0x40   :  { %342 = vmatprep.subr.bf16.mxu1 %v436_v0 }
  0x43   :  { %344 = vmatpush3.bf16.msra.mxu1 %v343_v29 }
  0x44   :  { %345 = vmatprep.subr.bf16.mxu1 %v436_v0 }
  0x47   :  { %347 = vmatpush3.bf16.msra.mxu1 %v346_v32 }
 0x104   :  { %v134_v38 = vpop.f32.mrb[0].mxu0 }
 0x105   :  { %v135_v39 = vadd.f32 %v134_v38, %v63_v37  ;;  %v282_v40 = vpop.f32.mrb[1].mxu0 }
 0x107   :  { %v138_v41 = vmax.f32 %v135_v39, 0.0 }
 0x109   :  { %316 = vmatmul.mubr.f32.vlgmr.msra.gmra.mrb[0].mxu1 %v138_v41 }
 0x1dc   :  { %v209_v45 = vpop.f32.mrb[0].mxu1 }
 0x1dd   :  { %v210_v46 = vadd.f32 %v209_v45, %v142_v43  ;;  %v317_v47 = vpop.f32.mrb[1].mxu1 }
 0x1df   :  { %v216_v48 = vmax.f32 %v210_v46, 0.0 }
 0x1e1   :  { %v217_v49 = vsel %vm215_vm2, %v216_v48, 0.0 }
 0x1e2   :  { %218 = vmax.xlane.f32.xlu0 %v217_v49 }
 0x26f   :  { %v219_v50 = vpop.xlane.xlu0 %218 }
 0x270   :  { %v220_v51 = vsub.f32 %v217_v49, %v219_v50 }
 0x272   :  { %v221_v52 = vmul.f32 1.442695, %v220_v51 }
 0x274   :  { %356 = vpow2.f32 %v221_v52 }
 0x27e   :  { %v357_v53 = vpop.eup %356 }
 0x27f   :  { %v223_v54 = vsel %vm215_vm2, %v357_v53, 0.0 }
 0x280   :  { %224 = vadd.xlane.f32.xlu0 %v223_v54 }
 0x30d   :  { %v225_v55 = vpop.xlane.xlu0 %224 }
 0x30e   :  { %358 = vrcp.f32 %v225_v55 }
 0x318   :  { %v359_v56 = vpop.eup %358 }
 0x319   :  { %v227_v57 = vmul.f32 %v359_v56, %v225_v55 }
 0x31b   :  { %v228_v58 = vsub.f32 2.0, %v227_v57 }
 0x31d   :  { %v229_v59 = vmul.f32 %v359_v56, %v228_v58 }
 0x31f   :  { %v230_v60 = vmul.f32 %v229_v59, %v223_v54 }
 0x321   :  { %v231_v61 = vsel %vm215_vm2, %v230_v60, %v210_v46 }
 0x322   :  { %232 = vst [vmem:[#allocation7] sm:$0xff] %v231_v61 }
 0x323   :  { %415 = shalt.err (!%p412_p6)
}
 0x324   :  { %s416_s10 = scalar_lea.hbm %s503_s2, 128 }
 0x325   :  { %p417_p7 = scmp.ne.s32.totalorder %s503_s2, %s416_s10  ;;  %p420_p8 = scmp.lt.u32.totalorder %s416_s10, %s503_s2 }
 0x327   :  { %p422_p9 = pnand %p420_p8, %p417_p7 }
 0x329   :  { %425 = shalt.err (!%p422_p9)
}
 0x32a   :  { %242 = dma.vmem_to_hbm [thread:$0]  %s240_s6, 128, %s503_s2, [#allocation4]  }
 0x32b   :  { %430 = dma.done.wait [#allocation4], 128  }
 0x32c   :  { %431 = vsyncadd [#allocation4], 4294967168 }
 0x32d   :  { %246 = vsyncpa [#allocation3], 1 }
 0x32e   :  { %247 = vsyncpa [#allocation6], 1 }
 0x32f   :  { %248 = vsyncpa [#allocation4], 1 }

</bundles_post_ra>
